<compile_context>
chip_gen: v6e
topology: v6e:2x2x1
jax: 0.10.0
libtpu: 0.0.40
codegen_flags: <defaults>
</compile_context>

<pallas_src>
import jax
import jax.numpy as jnp
import numpy as np
from jax.experimental import pallas as pl
from jax.experimental.pallas import tpu as pltpu


def _round_up(x, m):
    return (x + m - 1) // m * m


def path_attention(z, w1, b1, w2, *, tile_n=None):
    """z: (N, M, D); w1: (D, H) = Linear(D,H).weight^T; b1: (H,); w2: (H, 1)."""
    N, M, D = z.shape
    Dw, H = w1.shape
    assert Dw == D and w2.shape == (H, 1)
    MD, MH = M * D, M * H
    f32 = jnp.float32

    # ---- host-side layout plumbing (free / tiny) -------------------------
    z_flat = z.reshape(N, MD)                                   # lane-dense view of z
    # block-diagonal W1: col m*H+h of (z_flat @ w1_blk) == z[:, m, :] @ w1[:, h]
    w1_blk = jnp.kron(jnp.eye(M, dtype=f32), w1.astype(f32)).astype(z.dtype)   # (MD, MH)
    b1_rep = jnp.tile(jnp.reshape(b1, (1, H)).astype(f32), (1, M))             # (1, MH)
    w2_rep = jnp.tile(jnp.reshape(w2, (1, H)).astype(f32), (1, M))             # (1, MH)
    # group-sum + replicate matrix: (1,MH) @ rep -> (1,MD) with each path's
    # score broadcast across its D lanes (so softmax + pass 2 stay lane-wise).
    rep = jnp.kron(jnp.eye(M, dtype=f32), jnp.ones((H, D), dtype=f32))         # (MH, MD)

    # ---- tile size over nodes (re-derived per problem; small enough for the
    # 16 MiB v5e / 32 MiB v7x scoped-VMEM defaults, large enough to amortize
    # the ~0.35us per-grid-step overhead) ----------------------------------
    itemsize = jnp.dtype(z.dtype).itemsize
    if tile_n is None:
        tile_n = max(8, (2 << 20) // (MD * itemsize))           # ~2 MiB of z per buffer
    tile_n = _round_up(min(tile_n, _round_up(N, 8)), 8)
    num_tiles = pl.cdiv(N, tile_n)

    # ======================= pass 1: scores -> beta =======================
    def scores_kernel(z_ref, w1b_ref, b1_ref, w2_ref, rep_ref, beta_ref, acc_ref):
        i = pl.program_id(0)

        @pl.when(i == 0)
        def _init():
            acc_ref[...] = jnp.zeros_like(acc_ref)

        zb = z_ref[...]                                          # (tile_n, M*D)
        h = jnp.tanh(
            jnp.dot(zb, w1b_ref[...], preferred_element_type=jnp.float32)
            + b1_ref[...]
        )                                                        # (tile_n, M*H) f32
        p = h * w2_ref[...]                                      # second Linear as VPU mul

        # mask rows past N (ragged last tile) so they don't pollute the mean
        row = i * tile_n + jax.lax.broadcasted_iota(jnp.int32, (tile_n, 1), 0)
        p = jnp.where(row < N, p, 0.0)

        acc_ref[...] += jnp.sum(p, axis=0, keepdims=True)        # (1, M*H)

        @pl.when(i == pl.num_programs(0) - 1)
        def _finalize():
            # per-path mean score, replicated across each path's D lanes
            w_exp = jnp.dot(acc_ref[...], rep_ref[...],
                            preferred_element_type=jnp.float32) * (1.0 / N)   # (1, M*D)
            w_exp = w_exp - jnp.max(w_exp, axis=-1, keepdims=True)
            e = jnp.exp(w_exp)
            denom = jnp.sum(e, axis=-1, keepdims=True) * (1.0 / D)  # = sum_m exp(.)
            beta_ref[...] = e * pl.reciprocal(denom, approx=False)  # (1, M*D), beta[m] per lane

    beta_exp = pl.pallas_call(
        scores_kernel,
        out_shape=jax.ShapeDtypeStruct((1, MD), jnp.float32),
        grid_spec=pltpu.PrefetchScalarGridSpec(
            num_scalar_prefetch=0,
            grid=(num_tiles,),
            in_specs=[
                pl.BlockSpec((tile_n, MD), lambda i: (i, 0)),    # z tiles (pipelined)
                pl.BlockSpec((MD, MH), lambda i: (0, 0)),        # resident weights
                pl.BlockSpec((1, MH), lambda i: (0, 0)),
                pl.BlockSpec((1, MH), lambda i: (0, 0)),
                pl.BlockSpec((MH, MD), lambda i: (0, 0)),
            ],
            out_specs=pl.BlockSpec((1, MD), lambda i: (0, 0)),
            scratch_shapes=[pltpu.VMEM((1, MH), jnp.float32)],
        ),
        compiler_params=pltpu.CompilerParams(dimension_semantics=("arbitrary",)),
    )(z_flat, w1_blk, b1_rep, w2_rep, rep)

    # ================== pass 2: beta-weighted sum over M ==================
    def weighted_sum_kernel(beta_ref, z_ref, o_ref):
        prod = z_ref[...] * beta_ref[...]                        # f32 via promotion
        acc = prod[:, 0:D]
        for m in range(1, M):                                    # M is small & static
            acc = acc + prod[:, m * D:(m + 1) * D]
        o_ref[...] = acc.astype(o_ref.dtype)

    out = pl.pallas_call(
        weighted_sum_kernel,
        out_shape=jax.ShapeDtypeStruct((N, D), z.dtype),
        grid_spec=pltpu.PrefetchScalarGridSpec(
            num_scalar_prefetch=0,
            grid=(num_tiles,),
            in_specs=[
                pl.BlockSpec((1, MD), lambda i: (0, 0)),         # resident beta
                pl.BlockSpec((tile_n, MD), lambda i: (i, 0)),    # z tiles (pipelined)
            ],
            out_specs=pl.BlockSpec((tile_n, D), lambda i: (i, 0)),
        ),
        compiler_params=pltpu.CompilerParams(dimension_semantics=("parallel",)),
    )(beta_exp, z_flat)
    return out


def path_attention_ref(z, w1, b1, w2):
    # Pure-JAX mirror of the PyTorch forward.
    h = jnp.tanh(z @ w1 + b1.reshape(1, 1, -1))   # (N, M, H)
    s = h @ w2                                    # (N, M, 1)
    w = jnp.mean(s, axis=0)                       # (M, 1)
    beta = jax.nn.softmax(w, axis=0)              # (M, 1)
    return jnp.sum(beta[None, :, :] * z, axis=1)  # (N, D)


if __name__ == "__main__":
    # Small module-consistent shapes: N nodes, M meta-paths, D=in_size, H=out_size.
    N, M, D, H = 8, 4, 32, 16

    key = jax.random.PRNGKey(0)
    kz, kw1, kb1, kw2, kz2 = jax.random.split(key, 5)

    z = jax.random.normal(kz, (N, M, D), dtype=jnp.float32)
    bound1 = 1.0 / np.sqrt(D)
    w1 = jax.random.uniform(kw1, (D, H), jnp.float32, -bound1, bound1)  # Linear(D,H).weight^T
    b1 = jax.random.uniform(kb1, (H,), jnp.float32, -bound1, bound1)    # Linear(D,H).bias
    bound2 = 1.0 / np.sqrt(H)
    w2 = jax.random.uniform(kw2, (H, 1), jnp.float32, -bound2, bound2)  # Linear(H,1).weight^T

    out = jax.block_until_ready(path_attention(z, w1, b1, w2))
    ref = jax.block_until_ready(path_attention_ref(z, w1, b1, w2))
    np.testing.assert_allclose(np.asarray(out), np.asarray(ref), rtol=1e-5, atol=1e-5)

    # Exercise the multi-tile grid + ragged last tile path (grid of 3 N-tiles).
    N2 = 40
    z2 = jax.random.normal(kz2, (N2, M, D), dtype=jnp.float32)
    out2 = jax.block_until_ready(path_attention(z2, w1, b1, w2, tile_n=16))
    ref2 = jax.block_until_ready(path_attention_ref(z2, w1, b1, w2))
    np.testing.assert_allclose(np.asarray(out2), np.asarray(ref2), rtol=1e-5, atol=1e-5)

    print("KERNEL_OK")
</pallas_src>

<mosaic_0001>
module attributes {stable_mosaic.version = 11 : i64} {
  func.func @scores_kernel(%arg0: i32, %arg1: memref<8x128xf32, #tpu.memory_space<vmem>>, %arg2: memref<128x64xf32, #tpu.memory_space<vmem>>, %arg3: memref<1x64xf32, #tpu.memory_space<vmem>>, %arg4: memref<1x64xf32, #tpu.memory_space<vmem>>, %arg5: memref<64x128xf32, #tpu.memory_space<vmem>>, %arg6: memref<1x128xf32, #tpu.memory_space<vmem>>, %arg7: memref<1x64xf32, #tpu.memory_space<vmem>>) attributes {dimension_semantics = [#tpu.dimension_semantics<arbitrary>], iteration_bounds = array<i64: 1>, scalar_prefetch = 0 : i64, scratch_operands = 1 : i64, tpu.core_type = #tpu.core_type<tc>, window_params = [{transform_indices = @transform_0, window_bounds = array<i64: 8, 128>}, {pipeline_mode = #tpu.pipeline_mode<synchronous>, transform_indices = @transform_1, window_bounds = array<i64: 128, 64>}, {pipeline_mode = #tpu.pipeline_mode<synchronous>, transform_indices = @transform_2, window_bounds = array<i64: 1, 64>}, {pipeline_mode = #tpu.pipeline_mode<synchronous>, transform_indices = @transform_3, window_bounds = array<i64: 1, 64>}, {pipeline_mode = #tpu.pipeline_mode<synchronous>, transform_indices = @transform_4, window_bounds = array<i64: 64, 128>}, {pipeline_mode = #tpu.pipeline_mode<synchronous>, transform_indices = @transform_5, window_bounds = array<i64: 1, 128>}]} {
    %c0_i32 = arith.constant 0 : i32
    %0 = arith.cmpi eq, %arg0, %c0_i32 : i32
    %1 = arith.extui %0 : i1 to i32
    %c0_i32_0 = arith.constant 0 : i32
    %2 = arith.cmpi ne, %1, %c0_i32_0 : i32
    scf.if %2 {
      %cst_17 = arith.constant 0.000000e+00 : f32
      %31 = vector.broadcast %cst_17 : f32 to vector<1x64xf32>
      %c0_18 = arith.constant 0 : index
      %c0_19 = arith.constant 0 : index
      %32 = vector.load %arg7[%c0_18, %c0_19] : memref<1x64xf32, #tpu.memory_space<vmem>>, vector<1x64xf32>
      tpu.vector_store %arg7[%c0_18, %c0_19], %31 {strides = array<i32>} : memref<1x64xf32, #tpu.memory_space<vmem>>, vector<1x64xf32>,
    } else {
    }
    %c0 = arith.constant 0 : index
    %c0_1 = arith.constant 0 : index
    %3 = vector.load %arg1[%c0, %c0_1] : memref<8x128xf32, #tpu.memory_space<vmem>>, vector<8x128xf32>
    %c0_2 = arith.constant 0 : index
    %c0_3 = arith.constant 0 : index
    %4 = vector.load %arg2[%c0_2, %c0_3] : memref<128x64xf32, #tpu.memory_space<vmem>>, vector<128x64xf32>
    %cst = arith.constant dense<0.000000e+00> : vector<8x64xf32>
    %5 = tpu.matmul %3, %4, %cst {dimension_numbers = #tpu.dot_dimension_numbers<[1], [0], [0], [1], [0, 0, 1, 1], [], []>} : vector<8x128xf32>, vector<128x64xf32>, vector<8x64xf32> -> vector<8x64xf32>
    %c0_4 = arith.constant 0 : index
    %c0_5 = arith.constant 0 : index
    %6 = vector.load %arg3[%c0_4, %c0_5] : memref<1x64xf32, #tpu.memory_space<vmem>>, vector<1x64xf32>
    %7 = vector.broadcast %6 : vector<1x64xf32> to vector<8x64xf32>
    %8 = arith.addf %5, %7 : vector<8x64xf32>
    %9 = math.tanh %8 : vector<8x64xf32>
    %c0_6 = arith.constant 0 : index
    %c0_7 = arith.constant 0 : index
    %10 = vector.load %arg4[%c0_6, %c0_7] : memref<1x64xf32, #tpu.memory_space<vmem>>, vector<1x64xf32>
    %11 = vector.broadcast %10 : vector<1x64xf32> to vector<8x64xf32>
    %12 = arith.mulf %9, %11 : vector<8x64xf32>
    %c8_i32 = arith.constant 8 : i32
    %13 = arith.muli %arg0, %c8_i32 : i32
    %14 = tpu.iota {dimensions = array<i32: 0>} : vector<8x1xi32>
    %15 = vector.broadcast %13 : i32 to vector<8x1xi32>
    %16 = arith.addi %15, %14 : vector<8x1xi32>
    %c8_i32_8 = arith.constant 8 : i32
    %17 = vector.broadcast %c8_i32_8 : i32 to vector<8x1xi32>
    %18 = arith.cmpi slt, %16, %17 : vector<8x1xi32>
    %cst_9 = arith.constant 0.000000e+00 : f32
    %19 = vector.shape_cast %18 : vector<8x1xi1> to vector<8x1xi1>
    %20 = vector.broadcast %19 : vector<8x1xi1> to vector<8x64xi1>
    %21 = vector.broadcast %cst_9 : f32 to vector<8x64xf32>
    %22 = arith.select %20, %12, %21 : vector<8x64xi1>, vector<8x64xf32>
    %c0_10 = arith.constant 0 : index
    %c0_11 = arith.constant 0 : index
    %23 = vector.load %arg7[%c0_10, %c0_11] : memref<1x64xf32, #tpu.memory_space<vmem>>, vector<1x64xf32>
    %cst_12 = arith.constant dense<0.000000e+00> : vector<64xf32>
    %24 = vector.multi_reduction <add>, %22, %cst_12 [0] : vector<8x64xf32> to vector<64xf32>
    %25 = vector.shape_cast %24 : vector<64xf32> to vector<1x64xf32>
    %26 = arith.addf %23, %25 : vector<1x64xf32>
    %c0_13 = arith.constant 0 : index
    %c0_14 = arith.constant 0 : index
    %27 = vector.load %arg7[%c0_13, %c0_14] : memref<1x64xf32, #tpu.memory_space<vmem>>, vector<1x64xf32>
    tpu.vector_store %arg7[%c0_13, %c0_14], %26 {strides = array<i32>} : memref<1x64xf32, #tpu.memory_space<vmem>>, vector<1x64xf32>,
    %c0_i32_15 = arith.constant 0 : i32
    %28 = arith.cmpi eq, %arg0, %c0_i32_15 : i32
    %29 = arith.extui %28 : i1 to i32
    %c0_i32_16 = arith.constant 0 : i32
    %30 = arith.cmpi ne, %29, %c0_i32_16 : i32
    scf.if %30 {
      %c0_17 = arith.constant 0 : index
      %c0_18 = arith.constant 0 : index
      %31 = vector.load %arg7[%c0_17, %c0_18] : memref<1x64xf32, #tpu.memory_space<vmem>>, vector<1x64xf32>
      %c0_19 = arith.constant 0 : index
      %c0_20 = arith.constant 0 : index
      %32 = vector.load %arg5[%c0_19, %c0_20] : memref<64x128xf32, #tpu.memory_space<vmem>>, vector<64x128xf32>
      %cst_21 = arith.constant dense<0.000000e+00> : vector<1x128xf32>
      %33 = tpu.matmul %31, %32, %cst_21 {dimension_numbers = #tpu.dot_dimension_numbers<[1], [0], [0], [1], [0, 0, 1, 1], [], []>} : vector<1x64xf32>, vector<64x128xf32>, vector<1x128xf32> -> vector<1x128xf32>
      %cst_22 = arith.constant 1.250000e-01 : f32
      %34 = vector.broadcast %cst_22 : f32 to vector<1x128xf32>
      %35 = arith.mulf %33, %34 : vector<1x128xf32>
      %cst_23 = arith.constant dense<0xFF800000> : vector<1xf32>
      %36 = vector.multi_reduction <maximumf>, %35, %cst_23 [1] : vector<1x128xf32> to vector<1xf32>
      %37 = vector.shape_cast %36 : vector<1xf32> to vector<1x1xf32>
      %38 = vector.broadcast %37 : vector<1x1xf32> to vector<1x128xf32>
      %39 = arith.subf %35, %38 : vector<1x128xf32>
      %40 = math.exp %39 : vector<1x128xf32>
      %cst_24 = arith.constant dense<0.000000e+00> : vector<1xf32>
      %41 = vector.multi_reduction <add>, %40, %cst_24 [1] : vector<1x128xf32> to vector<1xf32>
      %42 = vector.shape_cast %41 : vector<1xf32> to vector<1x1xf32>
      %cst_25 = arith.constant 3.125000e-02 : f32
      %43 = vector.broadcast %cst_25 : f32 to vector<1x1xf32>
      %44 = arith.mulf %42, %43 : vector<1x1xf32>
      %45 = tpu.reciprocal %44 : vector<1x1xf32> -> vector<1x1xf32>
      %46 = vector.broadcast %45 : vector<1x1xf32> to vector<1x128xf32>
      %47 = arith.mulf %40, %46 : vector<1x128xf32>
      %c0_26 = arith.constant 0 : index
      %c0_27 = arith.constant 0 : index
      %48 = vector.load %arg6[%c0_26, %c0_27] : memref<1x128xf32, #tpu.memory_space<vmem>>, vector<1x128xf32>
      tpu.vector_store %arg6[%c0_26, %c0_27], %47 {strides = array<i32>} : memref<1x128xf32, #tpu.memory_space<vmem>>, vector<1x128xf32>,
    } else {
    }
    return
  }
  func.func @transform_0(%arg0: i32) -> (i32, i32) {
    %c0_i32 = arith.constant 0 : i32
    %c0_i32_0 = arith.constant 0 : i32
    return %arg0, %c0_i32 : i32, i32
  }
  func.func @transform_1(%arg0: i32) -> (i32, i32) {
    %c0_i32 = arith.constant 0 : i32
    %c0_i32_0 = arith.constant 0 : i32
    %c0_i32_1 = arith.constant 0 : i32
    return %c0_i32, %c0_i32_0 : i32, i32
  }
  func.func @transform_2(%arg0: i32) -> (i32, i32) {
    %c0_i32 = arith.constant 0 : i32
    %c0_i32_0 = arith.constant 0 : i32
    %c0_i32_1 = arith.constant 0 : i32
    return %c0_i32, %c0_i32_0 : i32, i32
  }
  func.func @transform_3(%arg0: i32) -> (i32, i32) {
    %c0_i32 = arith.constant 0 : i32
    %c0_i32_0 = arith.constant 0 : i32
    %c0_i32_1 = arith.constant 0 : i32
    return %c0_i32, %c0_i32_0 : i32, i32
  }
  func.func @transform_4(%arg0: i32) -> (i32, i32) {
    %c0_i32 = arith.constant 0 : i32
    %c0_i32_0 = arith.constant 0 : i32
    %c0_i32_1 = arith.constant 0 : i32
    return %c0_i32, %c0_i32_0 : i32, i32
  }
  func.func @transform_5(%arg0: i32) -> (i32, i32) {
    %c0_i32 = arith.constant 0 : i32
    %c0_i32_0 = arith.constant 0 : i32
    %c0_i32_1 = arith.constant 0 : i32
    return %c0_i32, %c0_i32_0 : i32, i32
  }
}

</mosaic_0001>

<bundles_post_ra>
// kernel: tpu_custom_call.1
= control target key start
LH: loop header
LB: loop body
LE: loop exit
PB: predicated region body
PF: predicated region fallthrough
CT: control target
= control target key end

     0   :  { %v379_v1 = vmov 0.0   ;;  %vm380_vm0 = vmmov 0   ;;  %s525_s0 = inlined_call_operand.vmem [shape: f32[8,128], index: 0, kind: input, shape index: {}]   ;;  %s526_s1 = inlined_call_operand.vmem [shape: f32[128,64], index: 1, kind: input, shape index: {}]   ;;  %s527_s2 = inlined_call_operand.vmem [shape: f32[1,64], index: 2, kind: input, shape index: {}]   ;;  %s528_s3 = inlined_call_operand.vmem [shape: f32[1,64], index: 3, kind: input, shape index: {}]   ;;  %s529_s4 = inlined_call_operand.vmem [shape: f32[64,128], index: 4, kind: input, shape index: {}]   ;;  %s530_s5 = inlined_call_operand.hbm [shape: f32[1,128], index: 5, kind: output, shape index: {}]  }
   0x1   :  { %v43_v0 = vld [vmem:[%s526_s1 + $0x78] sm:$0xff]  ;;  %294 = vmatprep.subr.mxu0 %v379_v1  ;;  %v42_v2 = vld [vmem:[%s526_s1 + $0x70] sm:$0xff]  ;;  %326 = vmatprep.mubr.msk.f32.mxu0 %vm380_vm0, %v379_v1  ;;  %v41_v3 = vld [vmem:[%s526_s1 + $0x68] sm:$0xff] }
   0x2   :  { %295 = vmatpush3.msra.mxu0 %v43_v0  ;;  %329 = vmatprep.subr.mxu1 %v379_v1  ;;  %v40_v4 = vld [vmem:[%s526_s1 + $0x60] sm:$0xff] }
   0x3   :  { %296 = vmatprep.subr.mxu0 %v379_v1  ;;  %345 = vmatprep.mubr.msk.f32.mxu1 %vm380_vm0, %v379_v1 }
   0x4   :  { %297 = vmatpush3.msra.mxu0 %v42_v2 }
   0x5   :  { %298 = vmatprep.subr.mxu0 %v379_v1 }
   0x6   :  { %299 = vmatpush3.msra.mxu0 %v41_v3 }
   0x7   :  { %10 = vsyncpa [#allocation4], 0  ;;  %300 = vmatprep.subr.mxu0 %v379_v1  ;;  %v39_v5 = vld [vmem:[%s526_s1 + $0x58] sm:$0xff]  ;;  %v38_v6 = vld [vmem:[%s526_s1 + $0x50] sm:$0xff]  ;;  %vm25_vm1 = vcmask 516096   ;;  %vm140_vm2 = vcmask 523264  }
   0x8   :  { %301 = vmatpush3.msra.mxu0 %v40_v4  ;;  %v37_v7 = vld [vmem:[%s526_s1 + $0x48] sm:$0xff]  ;;  %v36_v8 = vld [vmem:[%s526_s1 + $0x40] sm:$0xff]  ;;  %v35_v9 = vld [vmem:[%s526_s1 + $0x38] sm:$0xff]  ;;  %26 = vst.msk [vmem:[#allocation2] sm:$0x1] %vm25_vm1, %v379_v1  ;;  %vm237_vm3 = vcmask 1040384  }
   0x9   :  { %302 = vmatprep.subr.mxu0 %v379_v1  ;;  %v34_v10 = vld [vmem:[%s526_s1 + $0x30] sm:$0xff]  ;;  %v33_v11 = vld [vmem:[%s526_s1 + $0x28] sm:$0xff]  ;;  %v32_v12 = vld [vmem:[%s526_s1 + $0x20] sm:$0xff] }
   0xa   :  { %303 = vmatpush3.msra.mxu0 %v39_v5  ;;  %v31_v13 = vld [vmem:[%s526_s1 + $0x18] sm:$0xff]  ;;  %v30_v14 = vld [vmem:[%s526_s1 + $0x10] sm:$0xff]  ;;  %v29_v15 = vld [vmem:[%s526_s1 + $0x8] sm:$0xff] }
   0xb   :  { %304 = vmatprep.subr.mxu0 %v379_v1  ;;  %v28_v16 = vld [vmem:[%s526_s1] sm:$0xff]  ;;  %v162_v18 = vld [vmem:[%s529_s4 + $0x38] sm:$0xff]  ;;  %v161_v19 = vld [vmem:[%s529_s4 + $0x30] sm:$0xff] }
   0xc   :  { %305 = vmatpush3.msra.mxu0 %v38_v6  ;;  %v27_v17 = vld [vmem:[%s525_s0] sm:$0xff]  ;;  %330 = vmatpush3.msra.mxu1 %v162_v18  ;;  %v160_v20 = vld [vmem:[%s529_s4 + $0x28] sm:$0xff]  ;;  %v158_v22 = vld [vmem:[%s529_s4 + $0x18] sm:$0xff] }
   0xd   :  { %306 = vmatprep.subr.mxu0 %v379_v1  ;;  %331 = vmatprep.subr.mxu1 %v379_v1  ;;  %v159_v21 = vld [vmem:[%s529_s4 + $0x20] sm:$0xff]  ;;  %v157_v23 = vld [vmem:[%s529_s4 + $0x10] sm:$0xff]  ;;  %v156_v24 = vld [vmem:[%s529_s4 + $0x8] sm:$0xff] }
   0xe   :  { %307 = vmatpush3.msra.mxu0 %v37_v7  ;;  %332 = vmatpush3.msra.mxu1 %v161_v19  ;;  %v155_v25 = vld [vmem:[%s529_s4] sm:$0xff] }
   0xf   :  { %308 = vmatprep.subr.mxu0 %v379_v1  ;;  %333 = vmatprep.subr.mxu1 %v379_v1  ;;  %v265_v26 = vld [vmem:[%s527_s2] ss:$0 sm:$0xff]  ;;  %s381_s2 = smov [#allocation3]  }
  0x10   :  { %309 = vmatpush3.msra.mxu0 %v36_v8  ;;  %334 = vmatpush3.msra.mxu1 %v160_v20  ;;  %v266_v30 = vld [vmem:[%s528_s3] ss:$0 sm:$0xff]  ;;  %s257_s3 = sshll.u32 %s381_s2, 4  ;;  %s258_s3 = int_to_ptr.vmem [resolvable:$true] %s257_s3 }
  0x11   :  { %310 = vmatprep.subr.mxu0 %v379_v1  ;;  %335 = vmatprep.subr.mxu1 %v379_v1  ;;  %v139_v39 = vld [vmem:[#allocation2] sm:$0x1]  ;;  %s357_s4 = scalar_lea.vmem %s258_s3, 16  ;;  %s361_s20 = scalar_lea.vmem %s258_s3, 32 }
  0x12   :  { %311 = vmatpush3.msra.mxu0 %v35_v9  ;;  %336 = vmatpush3.msra.mxu1 %v159_v21  ;;  %p358_p0 = scmp.ne.s32.totalorder %s258_s3, %s357_s4  ;;  %p362_p1 = scmp.lt.s32.totalorder %s258_s3, %s258_s3 }
  0x13   :  { %312 = vmatprep.subr.mxu0 %v379_v1  ;;  %337 = vmatprep.subr.mxu1 %v379_v1  ;;  %p363_p2 = scmp.lt.s32.totalorder %s361_s20, %s357_s4 }
  0x14   :  { %313 = vmatpush3.msra.mxu0 %v34_v10  ;;  %338 = vmatpush3.msra.mxu1 %v158_v22 }
  0x15   :  { %314 = vmatprep.subr.mxu0 %v379_v1  ;;  %339 = vmatprep.subr.mxu1 %v379_v1  ;;  %p364_p3 = por %p363_p2, %p362_p1 }
  0x16   :  { %315 = vmatpush3.msra.mxu0 %v33_v11  ;;  %340 = vmatpush3.msra.mxu1 %v157_v23 }
  0x17   :  { %316 = vmatprep.subr.mxu0 %v379_v1  ;;  %341 = vmatprep.subr.mxu1 %v379_v1  ;;  %p365_p4 = pnand %p364_p3, %p358_p0 }
  0x18   :  { %317 = vmatpush3.msra.mxu0 %v32_v12  ;;  %342 = vmatpush3.msra.mxu1 %v156_v24 }
  0x19   :  { %318 = vmatprep.subr.mxu0 %v379_v1  ;;  %343 = vmatprep.subr.mxu1 %v379_v1 }
  0x1a   :  { %319 = vmatpush3.msra.mxu0 %v31_v13  ;;  %344 = vmatpush3.msra.mxu1 %v155_v25 }
  0x1b   :  { %320 = vmatprep.subr.mxu0 %v379_v1 }
  0x1c   :  { %321 = vmatpush3.msra.mxu0 %v30_v14 }
  0x1d   :  { %322 = vmatprep.subr.mxu0 %v379_v1 }
  0x1e   :  { %323 = vmatpush3.msra.mxu0 %v29_v15 }
  0x1f   :  { %324 = vmatprep.subr.mxu0 %v379_v1 }
  0x20   :  { %325 = vmatpush3.msra.mxu0 %v28_v16 }
  0x21   :  { %327 = vmatmul.mubr.f32.vlgmr.msra.gmra.mxu0 %v27_v17 }
  0xe1   :  { %v117_v27 = vpop.f32.mrf.mxu0 }
  0xe2   :  { %v118_v28 = vadd.f32 %v265_v26, %v117_v27 }
  0xe3   :  { %v328_v29 = vpop.f32.mrf.mxu0 }
  0xe4   :  { %351 = vtanh.f32 %v118_v28 }
  0xf1   :  { %v352_v31 = vpop.eup %351 }
  0xf2   :  { %v129_v32 = vmul.f32 %v352_v31, %v266_v30 }
  0xf4   :  { %v141_v33 = vsel %vm140_vm2, %v129_v32, 0.0 }
  0xf5   :  { %v142_v34 = vrot.slane %v141_v33, 4 }
  0xf7   :  { %v143_v35 = vadd.f32 %v142_v34, %v141_v33 }
  0xf9   :  { %v144_v36 = vrot.slane %v143_v35, 2 }
  0xfb   :  { %v145_v37 = vadd.f32 %v144_v36, %v143_v35 }
  0xfd   :  { %v146_v38 = vrot.slane %v145_v37, 1 }
  0xff   :  { %v147_v40 = vadd.f32 %v146_v38, %v145_v37 }
 0x101   :  { %v148_v41 = vadd.f32 %v147_v40, %v139_v39 }
 0x103   :  { %150 = vst.msk [vmem:[#allocation2] sm:$0x1] %vm25_vm1, %v148_v41 }
 0x10a   :  { %v154_v42 = vld [vmem:[#allocation2] sm:$0x1] }
 0x10b   :  { %346 = vmatmul.mubr.msk.f32.vlgmr.msra.gmra.mxu1 %vm140_vm2, %v154_v42 }
 0x1cb   :  { %v232_v43 = vpop.f32.mrf.mxu1 }
 0x1cc   :  { %v236_v44 = vmul.f32 0.125, %v232_v43 }
 0x1cd   :  { %v347_v45 = vpop.f32.mrf.mxu1 }
 0x1ce   :  { %v238_v46 = vsel %vm237_vm3, %v236_v44, -inf }
 0x1cf   :  { %239 = vmax.xlane.f32.xlu0 %v238_v46 }
 0x258   :  { %v240_v47 = vpop.xlane.xlu0 %239 }
 0x259   :  { %v241_v48 = vsub.f32 %v236_v44, %v240_v47 }
 0x25b   :  { %v242_v49 = vmul.f32 1.442695, %v241_v48 }
 0x25d   :  { %353 = vpow2.f32 %v242_v49 }
 0x26a   :  { %v354_v50 = vpop.eup %353 }
 0x26b   :  { %v244_v51 = vsel %vm237_vm3, %v354_v50, 0.0 }
 0x26c   :  { %245 = vadd.xlane.f32.xlu0 %v244_v51 }
 0x2f5   :  { %v246_v52 = vpop.xlane.xlu0 %245 }
 0x2f6   :  { %v247_v53 = vmul.f32 0.03125, %v246_v52 }
 0x2f8   :  { %355 = vrcp.f32 %v247_v53 }
 0x305   :  { %v356_v54 = vpop.eup %355 }
 0x306   :  { %v249_v55 = vmul.f32 %v356_v54, %v354_v50 }
 0x308   :  { %250 = vst [vmem:[#allocation3] sm:$0x1] %v249_v55 }
 0x309   :  { %368 = shalt.err (!%p365_p4)
}
 0x30a   :  { %260 = dma.vmem_to_hbm [thread:$0]  %s258_s3, 16, %s530_s5, [#allocation4]  }
 0x30b   :  { %377 = dma.done.wait [#allocation4], 16  }
 0x30c   :  { %378 = vsyncadd [#allocation4], 4294967280 }
 0x30d   :  { %264 = vsyncpa [#allocation4], 1 }

</bundles_post_ra>
